<compile_context>
chip_gen: v6e
topology: v6e:2x2x1
jax: 0.10.0
libtpu: 0.0.40
codegen_flags: <defaults>
</compile_context>

<pallas_src>
import math

import numpy as np
import jax
import jax.numpy as jnp
from jax.experimental import pallas as pl
from jax.experimental.pallas import tpu as pltpu

_LANES = 128


def _round_up(x, m):
    return ((x + m - 1) // m) * m


def _logit_kernel(x_ref, low_ref, high_ref, out_ref):
    """out = log(x - low) - log(high - x)  (== logit((x-low)/(high-low))).

    x_ref   : (TM, 128) theta values in native dtype (f32 / bf16)
    low_ref : (P, 128)  f32 lower-bound plane (P | TM, resident across grid)
    high_ref: (P, 128)  f32 upper-bound plane
    out_ref : (TM, 128) output in theta's dtype
    """
    x = x_ref[...].astype(jnp.float32)
    low = low_ref[...]
    high = high_ref[...]
    p = low_ref.shape[0]
    reps = x_ref.shape[0] // p
    if p > 1 and reps > 1:
        low = jnp.tile(low, (reps, 1))
        high = jnp.tile(high, (reps, 1))
    # p == 1 broadcasts automatically against (TM, 128).
    out_ref[...] = (jnp.log(x - low) - jnp.log(high - x)).astype(out_ref.dtype)


def restricted_transform_forward(theta, condition, low, high, dims_to_sample,
                                 block_rows=8192):
    """Forward pass of RestrictedTransformForConditional.

    theta: (B, Ds); condition: (1, Df); low/high: (1, Df) are the box-prior
    parameters of the (elementwise) MCMC transform; dims_to_sample: Ds indices.
    """
    del condition  # elementwise transform => fixed dims drop out of forward()
    theta = jnp.asarray(theta)
    if theta.dtype == np.float64:
        theta = theta.astype(jnp.float32)
    B, Ds = theta.shape
    dims = np.asarray(dims_to_sample)
    assert dims.shape[0] == Ds

    out_dtype = theta.dtype
    itemsize = theta.dtype.itemsize
    sublane = max(8, 8 * (4 // max(1, itemsize)))       # f32:8, bf16:16, int8:32

    low_s = jnp.asarray(low, dtype=jnp.float32).reshape(-1)[dims]    # (Ds,)
    high_s = jnp.asarray(high, dtype=jnp.float32).reshape(-1)[dims]  # (Ds,)

    # Period (in 128-lane rows) of the per-dim bounds across the flattened data.
    P = Ds // math.gcd(Ds, _LANES)
    pos = np.arange(P * _LANES) % Ds
    low_plane = jnp.take(low_s, jnp.asarray(pos)).reshape(P, _LANES)
    high_plane = jnp.take(high_s, jnp.asarray(pos)).reshape(P, _LANES)

    n_elem = B * Ds
    pad_unit = P * _LANES                                # lcm(Ds, 128) elements
    pad = (-n_elem) % pad_unit

    flat = theta.reshape(-1)                             # contiguous -> free
    if pad:
        # Ragged tail (B*Ds % 128 != 0): one small pad so the lane-dense view
        # exists. Pad with in-box midpoints (keeps logs finite); dropped later.
        mid = 0.5 * (low_s + high_s)
        pad_idx = jnp.asarray(np.arange(n_elem, n_elem + pad) % Ds)
        flat = jnp.concatenate([flat, jnp.take(mid, pad_idx).astype(out_dtype)])

    rows = flat.shape[0] // _LANES
    x2d = flat.reshape(rows, _LANES)                     # contiguous -> free

    # Tile size: multiple of lcm(sublane, P); large enough for multi-MiB blocks
    # (amortize ~0.35us/step), but capped near rows/4 so there are >= ~4 grid
    # steps (v7x dual-TC sharding + DMA/compute overlap). Last block may be
    # partial: its store is masked, so no padding to a tile multiple is needed.
    unit = (sublane * P) // math.gcd(sublane, P)
    block_rows = max(unit, (block_rows // unit) * unit)
    tm = min(block_rows, _round_up((rows + 3) // 4, unit))
    if tm >= rows:
        tm = rows                 # single full block; exempt from (8,128) rule
    grid = (pl.cdiv(rows, tm),)

    # VMEM: double-buffered in/out blocks + resident bound planes + margin,
    # clamped so we never request all of v7x's 64 MiB.
    blk_bytes = tm * _LANES * (itemsize + out_dtype.itemsize)
    need = 2 * blk_bytes + 2 * (2 * P * _LANES * 4) + (4 << 20)
    vmem_limit = int(min(max(need, 16 << 20), 48 << 20))

    out = pl.pallas_call(
        _logit_kernel,
        out_shape=jax.ShapeDtypeStruct((rows, _LANES), out_dtype),
        grid=grid,
        in_specs=[
            pl.BlockSpec((tm, _LANES), lambda i: (i, 0)),
            pl.BlockSpec((P, _LANES), lambda i: (0, 0)),
            pl.BlockSpec((P, _LANES), lambda i: (0, 0)),
        ],
        out_specs=pl.BlockSpec((tm, _LANES), lambda i: (i, 0)),
        compiler_params=pltpu.CompilerParams(
            dimension_semantics=("parallel",),
            vmem_limit_bytes=vmem_limit,
        ),
    )(x2d, low_plane, high_plane)

    if pad:
        return out.reshape(-1)[:n_elem].reshape(B, Ds)
    return out.reshape(B, Ds)


def _reference(theta, condition, low, high, dims_to_sample):
    """Pure-JAX (f32) reference mirroring the PyTorch module exactly."""
    B = theta.shape[0]
    d = jnp.asarray(np.asarray(dims_to_sample))
    full = jnp.tile(jnp.asarray(condition, dtype=jnp.float32), (B, 1))
    full = full.at[:, d].set(theta.astype(jnp.float32))
    u = (full - low) / (high - low)
    tf_full = jnp.log(u) - jnp.log1p(-u)
    return tf_full[:, d]


def _make_case(key, B, Df, dims, dtype=jnp.float32):
    k1, k2 = jax.random.split(key)
    low = (-1.0 - 0.1 * jnp.arange(Df, dtype=jnp.float32)).reshape(1, Df)
    high = (2.0 + 0.05 * jnp.arange(Df, dtype=jnp.float32)).reshape(1, Df)
    width = high - low
    assert bool(jnp.all(width > 0))          # non-degenerate box
    condition = low + width * jax.random.uniform(k1, (1, Df), minval=0.2, maxval=0.8)
    d = np.asarray(dims)
    low_s = low[:, d]
    width_s = width[:, d]
    theta = low_s + width_s * jax.random.uniform(k2, (B, len(d)), minval=0.2, maxval=0.8)
    return theta.astype(dtype), condition, low, high


if __name__ == "__main__":
    key = jax.random.PRNGKey(0)
    keys = jax.random.split(key, 5)

    cases = [
        # (name, B, Df, dims, dtype, atol, rtol)
        ("dense_small",   8,   32, list(range(0, 32, 2)), jnp.float32, 2e-4, 2e-4),
        ("periodic_P3",   16,  48, list(range(0, 48, 2)), jnp.float32, 2e-4, 2e-4),
        ("ragged_tail",   4,   32, list(range(0, 32, 2)), jnp.float32, 2e-4, 2e-4),
        ("bf16_io",       8,   32, list(range(0, 32, 2)), jnp.bfloat16, 2e-2, 2e-2),
        ("multi_block",   2504, 32, list(range(0, 32, 2)), jnp.float32, 2e-4, 2e-4),
    ]

    for k, (name, B, Df, dims, dtype, atol, rtol) in zip(keys, cases):
        theta, condition, low, high = _make_case(k, B, Df, dims, dtype=dtype)
        out = restricted_transform_forward(theta, condition, low, high, dims)
        out = jax.block_until_ready(out)

        assert out.shape == (B, len(dims)), f"{name}: bad shape {out.shape}"
        assert out.dtype == theta.dtype, f"{name}: dtype changed {out.dtype}"

        ref = _reference(theta, condition, low, high, dims)
        ok = jnp.allclose(out.astype(jnp.float32), ref, atol=atol, rtol=rtol)
        assert bool(ok), f"{name}: mismatch vs reference"

    print("KERNEL_OK")
</pallas_src>

<mosaic_0001>
module attributes {stable_mosaic.version = 11 : i64} {
  func.func @_logit_kernel(%arg0: i32, %arg1: memref<1x128xf32, #tpu.memory_space<vmem>>, %arg2: memref<1x128xf32, #tpu.memory_space<vmem>>, %arg3: memref<1x128xf32, #tpu.memory_space<vmem>>, %arg4: memref<1x128xf32, #tpu.memory_space<vmem>>) attributes {dimension_semantics = [#tpu.dimension_semantics<parallel>], iteration_bounds = array<i64: 1>, scalar_prefetch = 0 : i64, scratch_operands = 0 : i64, tpu.core_type = #tpu.core_type<tc>, window_params = [{transform_indices = @transform_0, window_bounds = array<i64: 1, 128>}, {pipeline_mode = #tpu.pipeline_mode<synchronous>, transform_indices = @transform_1, window_bounds = array<i64: 1, 128>}, {pipeline_mode = #tpu.pipeline_mode<synchronous>, transform_indices = @transform_2, window_bounds = array<i64: 1, 128>}, {transform_indices = @transform_3, window_bounds = array<i64: 1, 128>}]} {
    %c0 = arith.constant 0 : index
    %c0_0 = arith.constant 0 : index
    %0 = vector.load %arg1[%c0, %c0_0] : memref<1x128xf32, #tpu.memory_space<vmem>>, vector<1x128xf32>
    %c0_1 = arith.constant 0 : index
    %c0_2 = arith.constant 0 : index
    %1 = vector.load %arg2[%c0_1, %c0_2] : memref<1x128xf32, #tpu.memory_space<vmem>>, vector<1x128xf32>
    %c0_3 = arith.constant 0 : index
    %c0_4 = arith.constant 0 : index
    %2 = vector.load %arg3[%c0_3, %c0_4] : memref<1x128xf32, #tpu.memory_space<vmem>>, vector<1x128xf32>
    %3 = arith.subf %0, %1 : vector<1x128xf32>
    %4 = math.log %3 : vector<1x128xf32>
    %5 = arith.subf %2, %0 : vector<1x128xf32>
    %6 = math.log %5 : vector<1x128xf32>
    %7 = arith.subf %4, %6 : vector<1x128xf32>
    %c0_5 = arith.constant 0 : index
    %c0_6 = arith.constant 0 : index
    %8 = vector.load %arg4[%c0_5, %c0_6] : memref<1x128xf32, #tpu.memory_space<vmem>>, vector<1x128xf32>
    tpu.vector_store %arg4[%c0_5, %c0_6], %7 {strides = array<i32>} : memref<1x128xf32, #tpu.memory_space<vmem>>, vector<1x128xf32>,
    return
  }
  func.func @transform_0(%arg0: i32) -> (i32, i32) {
    %c0_i32 = arith.constant 0 : i32
    %c0_i32_0 = arith.constant 0 : i32
    return %arg0, %c0_i32 : i32, i32
  }
  func.func @transform_1(%arg0: i32) -> (i32, i32) {
    %c0_i32 = arith.constant 0 : i32
    %c0_i32_0 = arith.constant 0 : i32
    %c0_i32_1 = arith.constant 0 : i32
    return %c0_i32, %c0_i32_0 : i32, i32
  }
  func.func @transform_2(%arg0: i32) -> (i32, i32) {
    %c0_i32 = arith.constant 0 : i32
    %c0_i32_0 = arith.constant 0 : i32
    %c0_i32_1 = arith.constant 0 : i32
    return %c0_i32, %c0_i32_0 : i32, i32
  }
  func.func @transform_3(%arg0: i32) -> (i32, i32) {
    %c0_i32 = arith.constant 0 : i32
    %c0_i32_0 = arith.constant 0 : i32
    return %arg0, %c0_i32 : i32, i32
  }
}

</mosaic_0001>

<bundles_post_ra>
// kernel: tpu_custom_call.1
= control target key start
LH: loop header
LB: loop body
LE: loop exit
PB: predicated region body
PF: predicated region fallthrough
CT: control target
= control target key end

     0   :  { %8 = vsyncpa [#allocation3], 0  ;;  %s137_s0 = inlined_call_operand.hbm [shape: f32[1,128], index: 0, kind: input, shape index: {}]   ;;  %s138_s1 = inlined_call_operand.vmem [shape: f32[1,128], index: 1, kind: input, shape index: {}]   ;;  %s139_s2 = inlined_call_operand.vmem [shape: f32[1,128], index: 2, kind: input, shape index: {}]   ;;  %s140_s3 = inlined_call_operand.hbm [shape: f32[1,128], index: 3, kind: output, shape index: {}]  }
   0x1   :  { %9 = vsyncpa [#allocation4], 0  ;;  %s103_s12 = smov [#allocation2]  }
   0x2   :  { %s16_s13 = sshll.u32 %s103_s12, 4  ;;  %s17_s13 = int_to_ptr.vmem [resolvable:$true] %s16_s13 }
   0x3   :  { %s67_s14 = scalar_lea.vmem %s17_s13, 16  ;;  %s71_s15 = scalar_lea.vmem %s17_s13, 32 }
   0x4   :  { %p68_p0 = scmp.ne.s32.totalorder %s17_s13, %s67_s14  ;;  %p72_p1 = scmp.lt.s32.totalorder %s17_s13, %s17_s13 }
   0x5   :  { %p73_p2 = scmp.lt.s32.totalorder %s71_s15, %s67_s14 }
   0x7   :  { %p74_p3 = por %p73_p2, %p72_p1 }
   0x9   :  { %p75_p4 = pnand %p74_p3, %p68_p0 }
   0xb   :  { %78 = shalt.err (!%p75_p4)
}
   0xc   :  { %19 = dma.hbm_to_vmem [thread:$0]  %s137_s0, 16, %s17_s13, [#allocation3]  }
   0xd   :  { %99 = dma.done.wait [#allocation3], 16  }
   0xe   :  { %100 = vsyncadd [#allocation3], 4294967280  ;;  %v27_v0 = vld [vmem:[#allocation2] sm:$0x1]  ;;  %s104_s22 = smov [#allocation5]  }
   0xf   :  { %v28_v1 = vld [vmem:[%s138_s1] sm:$0x1]  ;;  %s44_s0 = sshll.u32 %s104_s22, 4  ;;  %s45_s0 = int_to_ptr.vmem [resolvable:$true] %s44_s0 }
  0x10   :  { %v29_v2 = vld [vmem:[%s139_s2] sm:$0x1]  ;;  %v30_v3 = vsub.f32 %v27_v0, %v28_v1  ;;  %s79_s23 = scalar_lea.vmem %s45_s0, 16  ;;  %s83_s1 = scalar_lea.vmem %s45_s0, 32 }
  0x11   :  { %v33_v4 = vsub.f32 %v29_v2, %v27_v0  ;;  %p80_p5 = scmp.ne.s32.totalorder %s45_s0, %s79_s23  ;;  %p84_p6 = scmp.lt.s32.totalorder %s45_s0, %s45_s0 }
  0x12   :  { %55 = vlog2.f32 %v30_v3  ;;  %p85_p7 = scmp.lt.s32.totalorder %s83_s1, %s79_s23 }
  0x13   :  { %57 = vlog2.f32 %v33_v4 }
  0x14   :  { %p86_p8 = por %p85_p7, %p84_p6 }
  0x16   :  { %p87_p9 = pnand %p86_p8, %p80_p5 }
  0x1f   :  { %v56_v5 = vpop.eup %55 }
  0x20   :  { %v58_v6 = vpop.eup %57  ;;  %v32_v7 = vmul.f32 0.6931472, %v56_v5 }
  0x21   :  { %v35_v8 = vmul.f32 0.6931472, %v58_v6 }
  0x23   :  { %v36_v9 = vsub.f32 %v32_v7, %v35_v8 }
  0x25   :  { %37 = vst [vmem:[#allocation5] sm:$0x1] %v36_v9 }
  0x26   :  { %90 = shalt.err (!%p87_p9)
}
  0x27   :  { %47 = dma.vmem_to_hbm [thread:$0]  %s45_s0, 16, %s140_s3, [#allocation4]  }
  0x28   :  { %101 = dma.done.wait [#allocation4], 16  }
  0x29   :  { %102 = vsyncadd [#allocation4], 4294967280 }
  0x2a   :  { %51 = vsyncpa [#allocation3], 1 }
  0x2b   :  { %52 = vsyncpa [#allocation4], 1 }

</bundles_post_ra>
